<compile_context>
chip_gen: v7x
topology: tpu7x:2x2x1
jax: 0.10.0
libtpu: 0.0.40
codegen_flags: <defaults>
</compile_context>

<pallas_src>
import jax
import jax.numpy as jnp
from jax.experimental import pallas as pl
from jax.experimental.pallas import tpu as pltpu  # noqa: F401  (kept for CompilerParams when scaling up)


def gcn_net_kernel(x_ref, m_ref, b1_ref, w2_ref, b2_ref, o_ref):
    """Whole-batch GCN Net forward in one grid step.

    x_ref : [B_PAD, N]     graphs on sublanes, nodes on lanes
    m_ref : [N, N*F]       adjacency with W1 folded in (GCNConv + flatten as one matmul)
    b1_ref: [1, N*F]       conv bias tiled over nodes (matches row-major flatten)
    w2_ref: [N*F, Y_PAD]   regression weight (PyTorch W^T), output lanes zero-padded to 128
    b2_ref: [1, Y_PAD]
    o_ref : [B_PAD, Y_PAD] full (8,128) tile -> unmasked store
    """
    # GCNConv + ReLU over the row-major flatten: one lane-dense MXU matmul + VPU epilogue.
    h = jnp.dot(x_ref[...], m_ref[...], preferred_element_type=jnp.float32)   # [B_PAD, N*F]
    h = jnp.maximum(h + b1_ref[...], 0.0)

    # Regression Linear: second MXU matmul (K = N*F, 128 output lanes), then bias.
    out = jnp.dot(h, w2_ref[...], preferred_element_type=jnp.float32)          # [B_PAD, Y_PAD]
    o_ref[...] = out + b2_ref[...]


@jax.jit
def gcn_net_forward(a_norm, x, w1, b1, w2t, b2):
    """Batched forward pass (shared graph topology).

    a_norm: [N, N]  normalized adjacency D^-1/2 (A+I) D^-1/2
    x:      [B, N, 1]
    w1:     [1, F_HID]    b1: [1, F_HID]
    w2t:    [N*F_HID, Y_DIM] (PyTorch Linear weight transposed)   b2: [1, Y_DIM]
    Returns [B, Y_DIM]
    """
    B, N, f_in = x.shape
    assert f_in == 1, "folding W1 into A_norm is only exact for F_IN == 1"
    f_hid = w1.shape[1]
    y_dim = w2t.shape[1]
    nf = N * f_hid
    y_pad = ((y_dim + 127) // 128) * 128
    b_pad = ((B + 7) // 8) * 8

    # Host-side weight plumbing (once per topology / parameter set; free vs. the kernel):
    #   M[j, n*F+f] = A_norm[n, j] * W1[0, f]
    m = (a_norm.T[:, :, None] * w1[0][None, None, :]).reshape(N, nf)   # [N, N*F]
    b1_tiled = jnp.tile(b1, (1, N))                                    # [1, N*F]
    w2p = jnp.pad(w2t, ((0, 0), (0, y_pad - y_dim)))                   # [N*F, Y_PAD]
    b2p = jnp.pad(b2, ((0, 0), (0, y_pad - y_dim)))                    # [1, Y_PAD]

    # Lane-dense activations: graphs on sublanes (padded to 8), nodes on lanes.
    x_rows = jnp.pad(x[..., 0], ((0, b_pad - B), (0, 0)))              # [B_PAD, N]

    out = pl.pallas_call(
        gcn_net_kernel,
        out_shape=jax.ShapeDtypeStruct((b_pad, y_pad), jnp.float32),
        grid=(1,),  # one chunky step; for huge B on v7x, split into 2 "parallel" chunks
        in_specs=[
            pl.BlockSpec((b_pad, N), lambda i: (0, 0)),
            pl.BlockSpec((N, nf), lambda i: (0, 0)),
            pl.BlockSpec((1, nf), lambda i: (0, 0)),
            pl.BlockSpec((nf, y_pad), lambda i: (0, 0)),
            pl.BlockSpec((1, y_pad), lambda i: (0, 0)),
        ],
        out_specs=pl.BlockSpec((b_pad, y_pad), lambda i: (0, 0)),
    )(x_rows, m, b1_tiled, w2p, b2p)

    return out[:B, :y_dim]


def build_normalized_adjacency(edge_index, num_nodes):
    """Dense D^{-1/2} (A + I) D^{-1/2} with GCN symmetric normalization (plain-JAX glue).

    For static graph topologies, call once and reuse — O(N^2) work outside the kernel.
    """
    src, dst = edge_index[0], edge_index[1]
    a = jnp.zeros((num_nodes, num_nodes), dtype=jnp.float32)
    a = a.at[dst, src].set(1.0)                     # messages flow src -> dst
    a = a + jnp.eye(num_nodes, dtype=jnp.float32)   # add self loops
    deg = a.sum(axis=1)
    dinv = jax.lax.rsqrt(deg)
    return dinv[:, None] * a * dinv[None, :]


if __name__ == "__main__":
    B = 4        # graphs per batch (all processed in one grid step)
    N = 8        # nodes per graph
    F_IN = 1     # GCNConv in_channels
    F_HID = 8    # GCNConv out_channels
    Y_DIM = 4    # regression output dim

    key = jax.random.PRNGKey(0)
    k_x, k_w1, k_b1, k_w2, k_b2 = jax.random.split(key, 5)

    # data.x per graph: [B, N, 1]
    x = jax.random.normal(k_x, (B, N, F_IN), dtype=jnp.float32)

    # data.edge_index: deterministic bidirectional ring over N nodes (shared topology)
    fwd = jnp.stack([jnp.arange(N), (jnp.arange(N) + 1) % N])
    bwd = jnp.stack([(jnp.arange(N) + 1) % N, jnp.arange(N)])
    edge_index = jnp.concatenate([fwd, bwd], axis=1).astype(jnp.int32)

    a_norm = build_normalized_adjacency(edge_index, N)   # computed once (static topology)

    # GCNConv(1, 8) parameters
    w1 = 0.1 * jax.random.normal(k_w1, (F_IN, F_HID), dtype=jnp.float32)        # [1, 8]
    b1 = 0.01 * jax.random.normal(k_b1, (1, F_HID), dtype=jnp.float32)          # [1, 8]

    # Linear(-1, y_dim) lazily resolves to in_features = N * F_HID
    w2t = 0.1 * jax.random.normal(k_w2, (N * F_HID, Y_DIM), dtype=jnp.float32)  # [64, 4]
    b2 = 0.01 * jax.random.normal(k_b2, (1, Y_DIM), dtype=jnp.float32)          # [1, 4]

    out = gcn_net_forward(a_norm, x, w1, b1, w2t, b2)
    jax.block_until_ready(out)

    # Pure-JAX reference of the original module math, per graph.
    h_ref = jnp.maximum(jnp.einsum("ij,bjf->bif", a_norm, x @ w1) + b1, 0.0)    # [B, N, F]
    ref = h_ref.reshape(B, -1) @ w2t + b2                                        # [B, Y_DIM]

    assert out.shape == (B, Y_DIM)
    assert jnp.allclose(out, ref, atol=1e-5, rtol=1e-5)

    print("KERNEL_OK")
</pallas_src>

<mosaic_0001>
module attributes {stable_mosaic.version = 11 : i64} {
  func.func @gcn_net_kernel(%arg0: i32, %arg1: memref<8x8xf32, #tpu.memory_space<vmem>>, %arg2: memref<8x64xf32, #tpu.memory_space<vmem>>, %arg3: memref<1x64xf32, #tpu.memory_space<vmem>>, %arg4: memref<64x128xf32, #tpu.memory_space<vmem>>, %arg5: memref<1x128xf32, #tpu.memory_space<vmem>>, %arg6: memref<8x128xf32, #tpu.memory_space<vmem>>) attributes {dimension_semantics = [#tpu.dimension_semantics<arbitrary>], iteration_bounds = array<i64: 1>, scalar_prefetch = 0 : i64, scratch_operands = 0 : i64, tpu.core_type = #tpu.core_type<tc>, window_params = [{pipeline_mode = #tpu.pipeline_mode<synchronous>, transform_indices = @transform_0, window_bounds = array<i64: 8, 8>}, {pipeline_mode = #tpu.pipeline_mode<synchronous>, transform_indices = @transform_1, window_bounds = array<i64: 8, 64>}, {pipeline_mode = #tpu.pipeline_mode<synchronous>, transform_indices = @transform_2, window_bounds = array<i64: 1, 64>}, {pipeline_mode = #tpu.pipeline_mode<synchronous>, transform_indices = @transform_3, window_bounds = array<i64: 64, 128>}, {pipeline_mode = #tpu.pipeline_mode<synchronous>, transform_indices = @transform_4, window_bounds = array<i64: 1, 128>}, {pipeline_mode = #tpu.pipeline_mode<synchronous>, transform_indices = @transform_5, window_bounds = array<i64: 8, 128>}]} {
    %c0 = arith.constant 0 : index
    %c0_0 = arith.constant 0 : index
    %0 = vector.load %arg1[%c0, %c0_0] : memref<8x8xf32, #tpu.memory_space<vmem>>, vector<8x8xf32>
    %c0_1 = arith.constant 0 : index
    %c0_2 = arith.constant 0 : index
    %1 = vector.load %arg2[%c0_1, %c0_2] : memref<8x64xf32, #tpu.memory_space<vmem>>, vector<8x64xf32>
    %cst = arith.constant dense<0.000000e+00> : vector<8x64xf32>
    %2 = tpu.matmul %0, %1, %cst {dimension_numbers = #tpu.dot_dimension_numbers<[1], [0], [0], [1], [0, 0, 1, 1], [], []>} : vector<8x8xf32>, vector<8x64xf32>, vector<8x64xf32> -> vector<8x64xf32>
    %c0_3 = arith.constant 0 : index
    %c0_4 = arith.constant 0 : index
    %3 = vector.load %arg3[%c0_3, %c0_4] : memref<1x64xf32, #tpu.memory_space<vmem>>, vector<1x64xf32>
    %4 = vector.broadcast %3 : vector<1x64xf32> to vector<8x64xf32>
    %5 = arith.addf %2, %4 : vector<8x64xf32>
    %cst_5 = arith.constant 0.000000e+00 : f32
    %6 = vector.broadcast %cst_5 : f32 to vector<8x64xf32>
    %7 = arith.maximumf %5, %6 : vector<8x64xf32>
    %c0_6 = arith.constant 0 : index
    %c0_7 = arith.constant 0 : index
    %8 = vector.load %arg4[%c0_6, %c0_7] : memref<64x128xf32, #tpu.memory_space<vmem>>, vector<64x128xf32>
    %cst_8 = arith.constant dense<0.000000e+00> : vector<8x128xf32>
    %9 = tpu.matmul %7, %8, %cst_8 {dimension_numbers = #tpu.dot_dimension_numbers<[1], [0], [0], [1], [0, 0, 1, 1], [], []>} : vector<8x64xf32>, vector<64x128xf32>, vector<8x128xf32> -> vector<8x128xf32>
    %c0_9 = arith.constant 0 : index
    %c0_10 = arith.constant 0 : index
    %10 = vector.load %arg5[%c0_9, %c0_10] : memref<1x128xf32, #tpu.memory_space<vmem>>, vector<1x128xf32>
    %11 = vector.broadcast %10 : vector<1x128xf32> to vector<8x128xf32>
    %12 = arith.addf %9, %11 : vector<8x128xf32>
    %c0_11 = arith.constant 0 : index
    %c0_12 = arith.constant 0 : index
    %13 = vector.load %arg6[%c0_11, %c0_12] : memref<8x128xf32, #tpu.memory_space<vmem>>, vector<8x128xf32>
    tpu.vector_store %arg6[%c0_11, %c0_12], %12 {strides = array<i32>} : memref<8x128xf32, #tpu.memory_space<vmem>>, vector<8x128xf32>,
    return
  }
  func.func @transform_0(%arg0: i32) -> (i32, i32) {
    %c0_i32 = arith.constant 0 : i32
    %c0_i32_0 = arith.constant 0 : i32
    %c0_i32_1 = arith.constant 0 : i32
    return %c0_i32, %c0_i32_0 : i32, i32
  }
  func.func @transform_1(%arg0: i32) -> (i32, i32) {
    %c0_i32 = arith.constant 0 : i32
    %c0_i32_0 = arith.constant 0 : i32
    %c0_i32_1 = arith.constant 0 : i32
    return %c0_i32, %c0_i32_0 : i32, i32
  }
  func.func @transform_2(%arg0: i32) -> (i32, i32) {
    %c0_i32 = arith.constant 0 : i32
    %c0_i32_0 = arith.constant 0 : i32
    %c0_i32_1 = arith.constant 0 : i32
    return %c0_i32, %c0_i32_0 : i32, i32
  }
  func.func @transform_3(%arg0: i32) -> (i32, i32) {
    %c0_i32 = arith.constant 0 : i32
    %c0_i32_0 = arith.constant 0 : i32
    %c0_i32_1 = arith.constant 0 : i32
    return %c0_i32, %c0_i32_0 : i32, i32
  }
  func.func @transform_4(%arg0: i32) -> (i32, i32) {
    %c0_i32 = arith.constant 0 : i32
    %c0_i32_0 = arith.constant 0 : i32
    %c0_i32_1 = arith.constant 0 : i32
    return %c0_i32, %c0_i32_0 : i32, i32
  }
  func.func @transform_5(%arg0: i32) -> (i32, i32) {
    %c0_i32 = arith.constant 0 : i32
    %c0_i32_0 = arith.constant 0 : i32
    %c0_i32_1 = arith.constant 0 : i32
    return %c0_i32, %c0_i32_0 : i32, i32
  }
}

</mosaic_0001>

<bundles_post_ra>
// kernel: gcn_net_forward.1
= control target key start
LH: loop header
LB: loop body
LE: loop exit
PB: predicated region body
PF: predicated region fallthrough
CT: control target
= control target key end

     0   :  { %vm29_vm0 = vcmask 64512   ;;  %v252_v0 = vmov 0.0   ;;  %vm253_vm1 = vmmov 0   ;;  %v254_v4 = vmov 0.0|0.0   ;;  %s324_s1 = inlined_call_operand.vmem [shape: f32[8,64], index: 1, kind: input, shape index: {}]   ;;  %s325_s0 = inlined_call_operand.vmem [shape: f32[8,8], index: 0, kind: input, shape index: {}]   ;;  %s326_s3 = inlined_call_operand.vmem [shape: f32[64,128], index: 3, kind: input, shape index: {}]   ;;  %s327_s2 = inlined_call_operand.vmem [shape: f32[1,64], index: 2, kind: input, shape index: {}]   ;;  %s328_s4 = inlined_call_operand.vmem [shape: f32[1,128], index: 4, kind: input, shape index: {}]   ;;  %s329_s5 = inlined_call_operand.vmem [shape: f32[8,128], index: 5, kind: output, shape index: {}]  }
   0x1   :  { %213 = vmatprep.subr.mxu0 %v252_v0  ;;  %v21_v1 = vld [vmem:[%s324_s1] sm:$0xff]  ;;  %215 = vmatprep.mubr.msk.f32.mxu0 %vm253_vm1, %v252_v0  ;;  %v105_v5 = vld [vmem:[%s326_s3 + $0x8] sm:$0xff]  ;;  %v106_v6 = vld [vmem:[%s326_s3 + $0x10] sm:$0xff]  ;;  %vm119_vm2 = vcmask 523264  }
   0x2   :  { %v20_v2 = vld [vmem:[%s325_s0] sm:$0xff]  ;;  %214 = vmatpush3.msra.mxu0 %v21_v1  ;;  %237 = vmatprep.subr.bf16.mxu1 %v254_v4  ;;  %v107_v7 = vld [vmem:[%s326_s3 + $0x18] sm:$0xff]  ;;  %v109_v11 = vld [vmem:[%s326_s3 + $0x28] sm:$0xff] }
   0x3   :  { %v104_v3 = vld [vmem:[%s326_s3] sm:$0xff]  ;;  %216 = vmatmul.mubr.msk.f32.vlgmr.msra.gmra.mrb[0].mxu0 %vm29_vm0, %v20_v2  ;;  %234 = vmatprep.mubr.msk.f32.mxu1 %vm253_vm1, %v252_v0  ;;  %v241_v9 = vpack.c.bf16 %v107_v7, %v106_v6  ;;  %v110_v13 = vld [vmem:[%s326_s3 + $0x30] sm:$0xff]  ;;  %v111_v14 = vld [vmem:[%s326_s3 + $0x38] sm:$0xff] }
   0x4   :  { %v238_v8 = vpack.c.bf16 %v105_v5, %v104_v3  ;;  %v108_v10 = vld [vmem:[%s326_s3 + $0x20] sm:$0xff]  ;;  %v247_v15 = vpack.c.bf16 %v111_v14, %v110_v13 }
   0x5   :  { %v244_v12 = vpack.c.bf16 %v109_v11, %v108_v10  ;;  %v198_v16 = vld [vmem:[%s327_s2] ss:$0 sm:$0xff] }
   0x6   :  { %239 = vmatpush3.bf16.msra.mxu1 %v238_v8  ;;  %v200_v21 = vld [vmem:[%s328_s4] ss:$0 sm:$0xff] }
   0x7   :  { %240 = vmatprep.subr.bf16.mxu1 %v254_v4 }
   0xa   :  { %242 = vmatpush3.bf16.msra.mxu1 %v241_v9 }
   0xb   :  { %243 = vmatprep.subr.bf16.mxu1 %v254_v4 }
   0xe   :  { %245 = vmatpush3.bf16.msra.mxu1 %v244_v12 }
   0xf   :  { %246 = vmatprep.subr.bf16.mxu1 %v254_v4 }
  0x12   :  { %248 = vmatpush3.bf16.msra.mxu1 %v247_v15 }
  0xd6   :  { %v99_v17 = vpop.f32.mrb[0].mxu0 }
  0xd7   :  { %v100_v18 = vadd.f32 %v198_v16, %v99_v17  ;;  %v217_v19 = vpop.f32.mrb[1].mxu0 }
  0xd9   :  { %v103_v20 = vmax.f32 %v100_v18, 0.0 }
  0xdb   :  { %235 = vmatmul.mubr.msk.f32.vlgmr.msra.gmra.mrb[0].mxu1 %vm119_vm2, %v103_v20 }
 0x1ae   :  { %v189_v22 = vpop.f32.mrb[0].mxu1 }
 0x1af   :  { %v190_v23 = vadd.f32 %v200_v21, %v189_v22  ;;  %v236_v24 = vpop.f32.mrb[1].mxu1 }
 0x1b1   :  { %193 = vst [vmem:[%s329_s5] sm:$0xff] %v190_v23 }

</bundles_post_ra>
